<compile_context>
chip_gen: v7x
topology: tpu7x:2x2x1
jax: 0.10.0
libtpu: 0.0.40
codegen_flags: <defaults>
</compile_context>

<pallas_src>
import math

import jax
import jax.numpy as jnp
import numpy as np
from jax import lax
from jax.experimental import pallas as pl
from jax.experimental.pallas import tpu as pltpu

_VMEM_LIMIT = 32 * 1024 * 1024  # safe on v5e/v6e (128 MiB) and v7x (64 MiB)


def _pick_bm(M, sublane=8, target=256):
    """Row-block for the projection grid: prefer `target`; otherwise the
    largest divisor of M that is a multiple of `sublane` and yields >= 2 grid
    steps (so both v7x TensorCores get work); otherwise the full M."""
    if M % target == 0 and M // target >= 2:
        return target
    best = M
    for bm in range(sublane, min(M, target) + 1, sublane):
        if M % bm == 0 and M // bm >= 2:
            best = bm
    return best


# ----------------------------------------------------------------------------
# Kernel 1a: fused QKV projection (self-attention: one x, one (E, 3E) weight)
# ----------------------------------------------------------------------------
def _fused_qkv_kernel(x_ref, w_ref, b_ref, o_ref):
    # x_ref: (bm, E)  w_ref: (E, 3E) pre-transposed  b_ref: (1, 3E) f32
    y = jnp.dot(x_ref[...], w_ref[...], preferred_element_type=jnp.float32)
    o_ref[...] = (y + b_ref[...]).astype(o_ref.dtype)


def _fused_qkv_projection(x2d, w_qkv_t, b_qkv, out_dtype):
    M, E = x2d.shape
    N = w_qkv_t.shape[1]
    sub = 16 if jnp.dtype(x2d.dtype) == jnp.dtype(jnp.bfloat16) else 8
    bm = _pick_bm(M, sublane=sub)
    esz = jnp.dtype(out_dtype).itemsize
    ce = pl.CostEstimate(
        flops=2 * M * E * N,
        transcendentals=0,
        bytes_accessed=M * E * x2d.dtype.itemsize
        + E * N * w_qkv_t.dtype.itemsize + N * 4 + M * N * esz)
    return pl.pallas_call(
        _fused_qkv_kernel,
        out_shape=jax.ShapeDtypeStruct((M, N), out_dtype),
        grid=(M // bm,),
        in_specs=[
            pl.BlockSpec((bm, E), lambda i: (i, 0)),
            pl.BlockSpec((E, N), lambda i: (0, 0)),
            pl.BlockSpec((1, N), lambda i: (0, 0)),
        ],
        out_specs=pl.BlockSpec((bm, N), lambda i: (i, 0)),
        compiler_params=pltpu.CompilerParams(
            dimension_semantics=("parallel",), vmem_limit_bytes=_VMEM_LIMIT),
        cost_estimate=ce,
    )(x2d, w_qkv_t, b_qkv)


# ----------------------------------------------------------------------------
# Kernel 1b: QKV projection for distinct query/key/value (one launch, 3 GEMMs)
# ----------------------------------------------------------------------------
def _qkv3_kernel(xq_ref, xk_ref, xv_ref, wq_ref, wk_ref, wv_ref, b_ref, o_ref):
    q = jnp.dot(xq_ref[...], wq_ref[...], preferred_element_type=jnp.float32)
    k = jnp.dot(xk_ref[...], wk_ref[...], preferred_element_type=jnp.float32)
    v = jnp.dot(xv_ref[...], wv_ref[...], preferred_element_type=jnp.float32)
    o_ref[...] = (jnp.concatenate([q, k, v], axis=-1)
                  + b_ref[...]).astype(o_ref.dtype)


def _qkv_projection_separate(xq, xk, xv, wq_t, wk_t, wv_t, b_qkv, out_dtype):
    M, E = xq.shape
    N = 3 * E
    sub = 16 if jnp.dtype(xq.dtype) == jnp.dtype(jnp.bfloat16) else 8
    bm = _pick_bm(M, sublane=sub)
    esz = jnp.dtype(out_dtype).itemsize
    ce = pl.CostEstimate(
        flops=2 * M * E * N,
        transcendentals=0,
        bytes_accessed=3 * M * E * xq.dtype.itemsize
        + 3 * E * E * wq_t.dtype.itemsize + N * 4 + M * N * esz)
    x_spec = pl.BlockSpec((bm, E), lambda i: (i, 0))
    w_spec = pl.BlockSpec((E, E), lambda i: (0, 0))
    return pl.pallas_call(
        _qkv3_kernel,
        out_shape=jax.ShapeDtypeStruct((M, N), out_dtype),
        grid=(M // bm,),
        in_specs=[x_spec, x_spec, x_spec, w_spec, w_spec, w_spec,
                  pl.BlockSpec((1, N), lambda i: (0, 0))],
        out_specs=pl.BlockSpec((bm, N), lambda i: (i, 0)),
        compiler_params=pltpu.CompilerParams(
            dimension_semantics=("parallel",), vmem_limit_bytes=_VMEM_LIMIT),
        cost_estimate=ce,
    )(xq, xk, xv, wq_t, wk_t, wv_t, b_qkv)


# ----------------------------------------------------------------------------
# Kernel 2: attention (all heads) + head merge + output projection, per batch
# ----------------------------------------------------------------------------
def _make_attn_kernel(head, d_k, with_mask, with_attn):
    E = head * d_k

    def kernel(*refs):
        idx = 0
        qkv_ref = refs[idx]; idx += 1
        if with_mask:
            keep_ref = refs[idx]; bias_ref = refs[idx + 1]; idx += 2
        wo_ref = refs[idx]; bo_ref = refs[idx + 1]; idx += 2
        out_ref = refs[idx]; idx += 1
        p_ref = refs[idx] if with_attn else None

        qkv = qkv_ref[0]                              # (S, 3E) compute dtype
        if with_mask:
            keep = keep_ref[0]                        # (S, S) f32: 1 keep / 0 drop
            bias = bias_ref[0]                        # (S, S) f32: 0 / -1e9

        ctxs = []
        for h in range(head):                         # heads unrolled in one step
            qh = qkv[:, h * d_k:(h + 1) * d_k]        # (S, d_k), scale pre-folded
            kh = qkv[:, E + h * d_k:E + (h + 1) * d_k]
            vh = qkv[:, 2 * E + h * d_k:2 * E + (h + 1) * d_k]
            # Contract the d_k axes directly (no k.T / XLU transpose).
            s = lax.dot_general(qh, kh, (((1,), (1,)), ((), ())),
                                preferred_element_type=jnp.float32)  # (S, S)
            if with_mask:
                s = s * keep + bias                   # == masked_fill(mask==0, -1e9)
            m = s.max(axis=-1, keepdims=True)
            e = jnp.exp(s - m)                        # f32 (v5e EUP is f32-only)
            p = e * pl.reciprocal(e.sum(axis=-1, keepdims=True), approx=True)
            if with_attn:
                p_ref[0, h] = p.astype(p_ref.dtype)
            ctxs.append(jnp.dot(p.astype(vh.dtype), vh,
                                preferred_element_type=jnp.float32))
        # Lane-dense (S, E) slab: head h occupies columns [h*d_k, (h+1)*d_k).
        ctx = jnp.concatenate(ctxs, axis=-1).astype(wo_ref.dtype)
        y = jnp.dot(ctx, wo_ref[...], preferred_element_type=jnp.float32)
        out_ref[0] = (y + bo_ref[...]).astype(out_ref.dtype)

    return kernel


def _attention_output(qkv, keep, bias, w_o_t, b_o, *, head, d_k, out_dtype,
                      return_attn):
    B, S, threeE = qkv.shape
    E = head * d_k
    with_mask = keep is not None
    kernel = _make_attn_kernel(head, d_k, with_mask, return_attn)

    in_specs = [pl.BlockSpec((1, S, 3 * E), lambda b: (b, 0, 0))]
    args = [qkv]
    if with_mask:
        mask_spec = pl.BlockSpec((1, S, S), lambda b: (b, 0, 0))
        in_specs += [mask_spec, mask_spec]
        args += [keep, bias]
    in_specs += [pl.BlockSpec((E, E), lambda b: (0, 0)),
                 pl.BlockSpec((1, E), lambda b: (0, 0))]
    args += [w_o_t, b_o]

    out_shapes = [jax.ShapeDtypeStruct((B, S, E), out_dtype)]
    out_specs = [pl.BlockSpec((1, S, E), lambda b: (b, 0, 0))]
    if return_attn:
        out_shapes.append(jax.ShapeDtypeStruct((B, head, S, S), jnp.float32))
        out_specs.append(pl.BlockSpec((1, head, S, S), lambda b: (b, 0, 0, 0)))

    flops = B * (4 * head * S * S * d_k + 2 * S * E * E)
    bytes_accessed = (qkv.size * qkv.dtype.itemsize
                      + w_o_t.size * w_o_t.dtype.itemsize + E * 4
                      + B * S * E * jnp.dtype(out_dtype).itemsize)
    if with_mask:
        bytes_accessed += (keep.size + bias.size) * 4
    if return_attn:
        bytes_accessed += B * head * S * S * 4
    ce = pl.CostEstimate(flops=flops, transcendentals=B * head * S * S,
                         bytes_accessed=bytes_accessed)

    results = pl.pallas_call(
        kernel,
        out_shape=tuple(out_shapes),
        grid=(B,),
        in_specs=in_specs,
        out_specs=tuple(out_specs),
        compiler_params=pltpu.CompilerParams(
            dimension_semantics=("parallel",), vmem_limit_bytes=_VMEM_LIMIT),
        cost_estimate=ce,
    )(*args)
    if return_attn:
        return results[0], results[1]
    return results[0], None


# ----------------------------------------------------------------------------
# MultiHeadAttention forward
# ----------------------------------------------------------------------------
def multihead_attention(params, query, key, value, mask=None, head=4,
                        compute_dtype=jnp.bfloat16, return_attn=True):
    """Forward pass of the PyTorch MultiHeadAttention module.

    Returns (output, p_attn); p_attn is None when return_attn=False.
    Dropout (p=0.1) is treated as eval-mode identity.
    """
    B, S, E = query.shape
    assert E % head == 0
    d_k = E // head
    scale = 1.0 / math.sqrt(d_k)
    f32 = jnp.float32

    # Pre-transpose weights once (nn.Linear stores (out, in)); fold the
    # 1/sqrt(d_k) score scale into W_q / b_q so the kernel never rescales.
    w_q_t = (params["w_q"] * scale).T.astype(compute_dtype)
    w_k_t = params["w_k"].T.astype(compute_dtype)
    w_v_t = params["w_v"].T.astype(compute_dtype)
    w_o_t = params["w_o"].T.astype(compute_dtype)
    b_qkv = jnp.concatenate([params["b_q"] * scale, params["b_k"],
                             params["b_v"]]).astype(f32).reshape(1, 3 * E)
    b_o = params["b_o"].astype(f32).reshape(1, E)

    if (query is key) and (key is value):
        # Self-attention: one launch, x read from HBM once, wide MXU N = 3E.
        w_qkv_t = jnp.concatenate([w_q_t, w_k_t, w_v_t], axis=1)   # (E, 3E)
        x2d = query.reshape(B * S, E).astype(compute_dtype)
        qkv = _fused_qkv_projection(x2d, w_qkv_t, b_qkv, compute_dtype)
    else:
        qkv = _qkv_projection_separate(
            query.reshape(B * S, E).astype(compute_dtype),
            key.reshape(B * S, E).astype(compute_dtype),
            value.reshape(B * S, E).astype(compute_dtype),
            w_q_t, w_k_t, w_v_t, b_qkv, compute_dtype)
    qkv = qkv.reshape(B, S, 3 * E)

    if mask is not None:
        # torch: mask.unsqueeze(1) broadcasts over heads; precompute a float
        # keep/bias pair so the kernel does mul+add instead of int compare.
        m = jnp.broadcast_to(jnp.asarray(mask), (B, S, S))
        keep = (m != 0).astype(f32)
        bias = jnp.where(m == 0, f32(-1000000000.0), f32(0.0))
    else:
        keep = bias = None

    return _attention_output(qkv, keep, bias, w_o_t, b_o, head=head, d_k=d_k,
                             out_dtype=query.dtype, return_attn=return_attn)


# ----------------------------------------------------------------------------
# Pure-JAX reference (matches the PyTorch module semantics, f32 throughout)
# ----------------------------------------------------------------------------
def multihead_attention_ref(params, query, key, value, mask=None, head=4):
    B, S, E = query.shape
    d_k = E // head

    def project(w, b, x):
        y = x @ w.T + b
        return y.reshape(B, S, head, d_k).transpose(0, 2, 1, 3)

    q = project(params["w_q"], params["b_q"], query)
    k = project(params["w_k"], params["b_k"], key)
    v = project(params["w_v"], params["b_v"], value)

    scores = jnp.einsum("bhqd,bhkd->bhqk", q, k) / math.sqrt(d_k)
    if mask is not None:
        mask4 = jnp.broadcast_to(jnp.asarray(mask), (B, S, S))[:, None]
        scores = jnp.where(mask4 == 0, -1000000000.0, scores)
    p = jax.nn.softmax(scores, axis=-1)
    x = jnp.einsum("bhqk,bhkd->bhqd", p, v)
    x = x.transpose(0, 2, 1, 3).reshape(B, S, E)
    return x @ params["w_o"].T + params["b_o"], p


# ----------------------------------------------------------------------------
# Main
# ----------------------------------------------------------------------------
if __name__ == "__main__":
    B, S, E, H = 2, 8, 32, 4          # batch, seq, embedding_dim, heads
    key0 = jax.random.PRNGKey(0)
    keys = jax.random.split(key0, 12)

    def init_linear(kw, kb, fan_in):
        bound = 1.0 / math.sqrt(fan_in)
        w = jax.random.uniform(kw, (E, E), jnp.float32, -bound, bound)
        b = jax.random.uniform(kb, (E,), jnp.float32, -bound, bound)
        return w, b

    w_q, b_q = init_linear(keys[0], keys[1], E)
    w_k, b_k = init_linear(keys[2], keys[3], E)
    w_v, b_v = init_linear(keys[4], keys[5], E)
    w_o, b_o = init_linear(keys[6], keys[7], E)
    params = dict(w_q=w_q, b_q=b_q, w_k=w_k, b_k=b_k,
                  w_v=w_v, b_v=b_v, w_o=w_o, b_o=b_o)

    query = jax.random.normal(keys[8], (B, S, E), jnp.float32)
    key_t = jax.random.normal(keys[9], (B, S, E), jnp.float32)
    value = jax.random.normal(keys[10], (B, S, E), jnp.float32)
    # Causal-style mask (B, S, S): 1 = keep, 0 = mask out.
    mask = jnp.tril(jnp.ones((S, S), jnp.int32))[None, :, :].repeat(B, axis=0)

    # 1) Main perf path: self-attention, fused (E,3E) QKV weight, bf16 MXU
    #    inputs with f32 accumulation.
    out, attn = multihead_attention(params, query, query, query, mask=mask,
                                    head=H, compute_dtype=jnp.bfloat16)
    out = jax.block_until_ready(out)
    attn = jax.block_until_ready(attn)
    out_r, attn_r = multihead_attention_ref(params, query, query, query,
                                            mask=mask, head=H)
    np.testing.assert_allclose(np.asarray(out), np.asarray(out_r),
                               rtol=1e-1, atol=1e-1)
    np.testing.assert_allclose(np.asarray(attn), np.asarray(attn_r),
                               rtol=1e-1, atol=1e-1)

    # 2) Distinct query/key/value (cross-attention path), f32 compute.
    out2, attn2 = multihead_attention(params, query, key_t, value, mask=mask,
                                      head=H, compute_dtype=jnp.float32)
    out2 = jax.block_until_ready(out2)
    out2_r, attn2_r = multihead_attention_ref(params, query, key_t, value,
                                              mask=mask, head=H)
    np.testing.assert_allclose(np.asarray(out2), np.asarray(out2_r),
                               rtol=1e-2, atol=1e-2)
    np.testing.assert_allclose(np.asarray(attn2), np.asarray(attn2_r),
                               rtol=1e-2, atol=1e-2)

    # 3) No mask, no p_attn output (bandwidth-lean serving path), f32 compute.
    out3, attn3 = multihead_attention(params, query, query, query, mask=None,
                                      head=H, compute_dtype=jnp.float32,
                                      return_attn=False)
    out3 = jax.block_until_ready(out3)
    out3_r, _ = multihead_attention_ref(params, query, query, query,
                                        mask=None, head=H)
    np.testing.assert_allclose(np.asarray(out3), np.asarray(out3_r),
                               rtol=1e-2, atol=1e-2)
    assert attn3 is None

    print("KERNEL_OK")
</pallas_src>

<mosaic_0001>
module attributes {stable_mosaic.version = 11 : i64} {
  func.func @_fused_qkv_kernel(%arg0: i32, %arg1: memref<16x32xbf16, #tpu.memory_space<vmem>>, %arg2: memref<32x96xbf16, #tpu.memory_space<vmem>>, %arg3: memref<1x96xf32, #tpu.memory_space<vmem>>, %arg4: memref<16x96xbf16, #tpu.memory_space<vmem>>) attributes {dimension_semantics = [#tpu.dimension_semantics<parallel>], iteration_bounds = array<i64: 1>, scalar_prefetch = 0 : i64, scratch_operands = 0 : i64, tpu.core_type = #tpu.core_type<tc>, window_params = [{transform_indices = @transform_0, window_bounds = array<i64: 16, 32>}, {pipeline_mode = #tpu.pipeline_mode<synchronous>, transform_indices = @transform_1, window_bounds = array<i64: 32, 96>}, {pipeline_mode = #tpu.pipeline_mode<synchronous>, transform_indices = @transform_2, window_bounds = array<i64: 1, 96>}, {transform_indices = @transform_3, window_bounds = array<i64: 16, 96>}]} {
    %c0 = arith.constant 0 : index
    %c0_0 = arith.constant 0 : index
    %0 = vector.load %arg1[%c0, %c0_0] : memref<16x32xbf16, #tpu.memory_space<vmem>>, vector<16x32xbf16>
    %c0_1 = arith.constant 0 : index
    %c0_2 = arith.constant 0 : index
    %1 = vector.load %arg2[%c0_1, %c0_2] : memref<32x96xbf16, #tpu.memory_space<vmem>>, vector<32x96xbf16>
    %cst = arith.constant dense<0.000000e+00> : vector<16x96xf32>
    %2 = tpu.matmul %0, %1, %cst {dimension_numbers = #tpu.dot_dimension_numbers<[1], [0], [0], [1], [0, 0, 1, 1], [], []>} : vector<16x32xbf16>, vector<32x96xbf16>, vector<16x96xf32> -> vector<16x96xf32>
    %c0_3 = arith.constant 0 : index
    %c0_4 = arith.constant 0 : index
    %3 = vector.load %arg3[%c0_3, %c0_4] : memref<1x96xf32, #tpu.memory_space<vmem>>, vector<1x96xf32>
    %4 = vector.broadcast %3 : vector<1x96xf32> to vector<16x96xf32>
    %5 = arith.addf %2, %4 : vector<16x96xf32>
    %6 = arith.truncf %5 : vector<16x96xf32> to vector<16x96xbf16>
    %c0_5 = arith.constant 0 : index
    %c0_6 = arith.constant 0 : index
    %7 = vector.load %arg4[%c0_5, %c0_6] : memref<16x96xbf16, #tpu.memory_space<vmem>>, vector<16x96xbf16>
    tpu.vector_store %arg4[%c0_5, %c0_6], %6 {strides = array<i32>} : memref<16x96xbf16, #tpu.memory_space<vmem>>, vector<16x96xbf16>,
    return
  }
  func.func @transform_0(%arg0: i32) -> (i32, i32) {
    %c0_i32 = arith.constant 0 : i32
    %c0_i32_0 = arith.constant 0 : i32
    return %arg0, %c0_i32 : i32, i32
  }
  func.func @transform_1(%arg0: i32) -> (i32, i32) {
    %c0_i32 = arith.constant 0 : i32
    %c0_i32_0 = arith.constant 0 : i32
    %c0_i32_1 = arith.constant 0 : i32
    return %c0_i32, %c0_i32_0 : i32, i32
  }
  func.func @transform_2(%arg0: i32) -> (i32, i32) {
    %c0_i32 = arith.constant 0 : i32
    %c0_i32_0 = arith.constant 0 : i32
    %c0_i32_1 = arith.constant 0 : i32
    return %c0_i32, %c0_i32_0 : i32, i32
  }
  func.func @transform_3(%arg0: i32) -> (i32, i32) {
    %c0_i32 = arith.constant 0 : i32
    %c0_i32_0 = arith.constant 0 : i32
    return %arg0, %c0_i32 : i32, i32
  }
}

</mosaic_0001>

<bundles_post_ra>
// kernel: tpu_custom_call.1
= control target key start
LH: loop header
LB: loop body
LE: loop exit
PB: predicated region body
PF: predicated region fallthrough
CT: control target
= control target key end

     0   :  { %8 = vsyncpa [#allocation3], 0  ;;  %s325_s0 = inlined_call_operand.hbm [shape: bf16[16,32], index: 0, kind: input, shape index: {}]   ;;  %s326_s1 = inlined_call_operand.hbm [shape: bf16[32,96], index: 1, kind: input, shape index: {}]   ;;  %s327_s2 = inlined_call_operand.vmem [shape: f32[1,96], index: 2, kind: input, shape index: {}]   ;;  %s328_s3 = inlined_call_operand.hbm [shape: bf16[16,96], index: 3, kind: output, shape index: {}]  }
   0x1   :  { %9 = vsyncpa [#allocation6], 0 }
   0x2   :  { %10 = vsyncpa [#allocation4], 0  ;;  %s250_s12 = smov [#allocation2]   ;;  %s178_s16 = scalar_lea.hbm %s325_s0, 128 }
   0x3   :  { %s16_s13 = sshll.u32 %s250_s12, 4  ;;  %p179_p0 = scmp.ne.s32.totalorder %s325_s0, %s178_s16  ;;  %s17_s13 = int_to_ptr.vmem [resolvable:$true] %s16_s13 }
   0x4   :  { %p182_p1 = scmp.lt.u32.totalorder %s178_s16, %s325_s0 }
   0x6   :  { %p184_p2 = pnand %p182_p1, %p179_p0 }
   0x8   :  { %187 = shalt.err (!%p184_p2)
}
   0x9   :  { %s188_s21 = scalar_lea.vmem %s17_s13, 128  ;;  %p193_p4 = scmp.lt.s32.totalorder %s17_s13, %s17_s13 }
   0xa   :  { %p189_p3 = scmp.ne.s32.totalorder %s17_s13, %s188_s21  ;;  %p194_p5 = scmp.lt.s32.totalorder %s188_s21, %s188_s21 }
   0xc   :  { %p195_p6 = por %p194_p5, %p193_p4 }
   0xe   :  { %p196_p7 = pnand %p195_p6, %p189_p3 }
  0x10   :  { %199 = shalt.err (!%p196_p7)
}
  0x11   :  { %s251_s22 = smov 64   ;;  %s252_s23 = smov 4  }
  0x12   :  { %22 = dma.hbm_to_vmem [thread:$0]  %s325_s0, 128, %s17_s13, [#allocation3], %s251_s22, %s251_s22, %s252_s23  }
  0x13   :  { %s253_s26 = smov [#allocation5]   ;;  %s200_s30 = scalar_lea.hbm %s326_s1, 256 }
  0x14   :  { %s28_s27 = sshll.u32 %s253_s26, 4  ;;  %p201_p8 = scmp.ne.s32.totalorder %s326_s1, %s200_s30  ;;  %s29_s27 = int_to_ptr.vmem [resolvable:$true] %s28_s27 }
  0x15   :  { %p204_p9 = scmp.lt.u32.totalorder %s200_s30, %s326_s1 }
  0x17   :  { %p206_p10 = pnand %p204_p9, %p201_p8 }
  0x19   :  { %209 = shalt.err (!%p206_p10)
}
  0x1a   :  { %s210_s8 = scalar_lea.vmem %s29_s27, 256  ;;  %p215_p12 = scmp.lt.s32.totalorder %s29_s27, %s29_s27 }
  0x1b   :  { %p211_p11 = scmp.ne.s32.totalorder %s29_s27, %s210_s8  ;;  %p216_p13 = scmp.lt.s32.totalorder %s210_s8, %s210_s8 }
  0x1d   :  { %p217_p0 = por %p216_p13, %p215_p12 }
  0x1f   :  { %p218_p1 = pnand %p217_p0, %p211_p11 }
  0x21   :  { %221 = shalt.err (!%p218_p1)
}
  0x22   :  { %34 = dma.hbm_to_vmem [thread:$0]  %s326_s1, 256, %s29_s27, [#allocation6], %s251_s22, %s251_s22, %s252_s23  }
  0x23   :  { %244 = dma.done.wait [#allocation3], 128  }
  0x24   :  { %245 = vsyncadd [#allocation3], 4294967168 }
  0x25   :  { %246 = dma.done.wait [#allocation6], 256  }
  0x26   :  { %247 = vsyncadd [#allocation6], 4294967040  ;;  %v254_v0 = vmov 0.0   ;;  %vm255_vm0 = vmmov 0   ;;  %v175_v1 = vld [vmem:[#allocation5] sm:$0xff]   ;;  %v176_v2 = vld [vmem:[#allocation5 + $0x8] sm:$0xff]  }
  0x27   :  { %160 = vmatprep.subr.bf16.mxu0 %v254_v0  ;;  %164 = vmatprep.mubr.msk.bf16.mxu0 %vm255_vm0, %v254_v0  ;;  %v177_v3 = vld [vmem:[#allocation2] sm:$0xff]   ;;  %vm74_vm1 = vcmask 261120   ;;  %vm127_vm2 = vcmask 781312   ;;  %s256_s1 = smov [#allocation7]  }
  0x28   :  { %161 = vmatpush3.bf16.msra.mxu0 %v175_v1  ;;  %v148_v4 = vld [vmem:[%s327_s2] ss:$0 sm:$0xff]  ;;  %s135_s12 = sshll.u32 %s256_s1, 4  ;;  %s136_s12 = int_to_ptr.vmem [resolvable:$true] %s135_s12 }
  0x29   :  { %162 = vmatprep.subr.bf16.mxu0 %v254_v0  ;;  %s222_s13 = scalar_lea.vmem %s136_s12, 128  ;;  %p227_p3 = scmp.lt.s32.totalorder %s136_s12, %s136_s12 }
  0x2a   :  { %p223_p2 = scmp.ne.s32.totalorder %s136_s12, %s222_s13  ;;  %p228_p4 = scmp.lt.s32.totalorder %s222_s13, %s222_s13 }
  0x2c   :  { %163 = vmatpush3.bf16.msra.mxu0 %v176_v2  ;;  %p229_p5 = por %p228_p4, %p227_p3 }
  0x2e   :  { %p230_p6 = pnand %p229_p5, %p223_p2 }
  0x2f   :  { %165 = vmatmul.mubr.msk.bf16.vlgmr.msra.gmra.mrb[0].mxu0 %vm74_vm1, %v177_v3 }
 0x102   :  { %v112_v5 = vpop.f32.mrb[0].mxu0 }
 0x103   :  { %v113_v6 = vadd.f32 %v148_v4, %v112_v5  ;;  %v166_v7 = vpop.f32.mrb[1].mxu0 }
 0x104   :  { %v115_v8 = vpop.f32.mrb[2].mxu0 }
 0x105   :  { %v155_v9 = vpack.c.bf16 %v113_v6, %v113_v6  ;;  %v116_v10 = vadd.f32 %v148_v4, %v115_v8  ;;  %v167_v11 = vpop.f32.mrb[3].mxu0 }
 0x107   :  { %v156_v12 = vpack.c.bf16 %v116_v10, %v116_v10  ;;  %128 = vst.msk [vmem:[#allocation7] sm:$0xf] %vm127_vm2, %v155_v9 }
 0x109   :  { %129 = vst.msk [vmem:[#allocation7 + $0x4] sm:$0xf] %vm127_vm2, %v156_v12 }
 0x10a   :  { %233 = shalt.err (!%p230_p6)
}
 0x10b   :  { %s234_s15 = scalar_lea.hbm %s328_s3, 128 }
 0x10c   :  { %p235_p7 = scmp.ne.s32.totalorder %s328_s3, %s234_s15  ;;  %p238_p8 = scmp.lt.u32.totalorder %s234_s15, %s328_s3 }
 0x10e   :  { %p240_p9 = pnand %p238_p8, %p235_p7 }
 0x110   :  { %243 = shalt.err (!%p240_p9)
}
 0x111   :  { %141 = dma.vmem_to_hbm [thread:$0]  %s136_s12, 128, %s328_s3, [#allocation4], %s251_s22, %s251_s22, %s252_s23  }
 0x112   :  { %248 = dma.done.wait [#allocation4], 128  }
 0x113   :  { %249 = vsyncadd [#allocation4], 4294967168 }
 0x114   :  { %145 = vsyncpa [#allocation3], 1 }
 0x115   :  { %146 = vsyncpa [#allocation6], 1 }
 0x116   :  { %147 = vsyncpa [#allocation4], 1 }

</bundles_post_ra>
